<compile_context>
chip_gen: v7x
topology: tpu7x:2x2x1
jax: 0.10.0
libtpu: 0.0.40
codegen_flags: <defaults>
</compile_context>

<pallas_src>
import jax
import jax.numpy as jnp
from jax.experimental import pallas as pl
from jax.experimental.pallas import tpu as pltpu

# ---- small config consistent with the module -------------------------------
B, N = 2, 8                     # batch, sequence length (va frames)
FRAME = 40                      # waveform samples per encoder frame (stand-in)
D = 32                          # encoder output dim == VadCondition dim
AR_DIM = 32                     # conf['ar']['dim']
N_BINS = 4                      # len(conf['vap']['bin_times'])
N_CLASSES = 2 ** (2 * N_BINS)   # discrete VAP head -> 256 classes
VA_HIST_BINS = 5                # conf['va_cond']['history_bins']
COND_IN = 2 + VA_HIST_BINS      # fused [va | va_history] feature width
LN_EPS = 1e-5
T = B * N                       # 16 rows total -> one kernel invocation
K_X = FRAME + COND_IN + 1       # 48 = [wav | cond | ones] LHS width
K_W = K_X + D                   # 80 = stacked RHS slab rows


def _projection_kernel(x_ref, w_cond_ref, w_main_ref, out_ref):
    x = x_ref[...]                                    # (T, 48) bf16

    # VadCondition: Linear(2,D)(va) + Linear(hist,D)(va_history) fused as one
    # bf16 MXU dot (f32 accumulation); wav rows of the weight slab are zero
    # and the ones-lane row carries the summed bias.
    vc = jnp.dot(x, w_cond_ref[...], preferred_element_type=jnp.float32)
    mu = jnp.mean(vc, axis=-1, keepdims=True)
    cen = vc - mu
    var = jnp.mean(cen * cen, axis=-1, keepdims=True)
    vc = cen * jax.lax.rsqrt(var + LN_EPS)            # gamma/beta folded out

    # out = z_enc@W_head + (LN(vc)*g)@W_head + (beta@W_head + all biases).
    # Affine factors are pre-folded in the wrapper; two lane-dense (., 256)
    # MXU dots against static sublane-aligned views of one resident
    # (80, 256) bf16 weight slab (offsets 0 / 48 are bf16-pack aligned).
    acc = jnp.dot(x, w_main_ref[0:K_X, :], preferred_element_type=jnp.float32)
    acc = acc + jnp.dot(vc.astype(jnp.bfloat16), w_main_ref[K_X:K_W, :],
                        preferred_element_type=jnp.float32)
    out_ref[...] = acc.astype(out_ref.dtype)


def _full_spec(shape):
    # whole (small) array resident for the single grid step
    return pl.BlockSpec(shape, lambda i: (0,) * len(shape))


def projection_model_forward(waveform, va, va_history, params):
    """waveform: (B, N*FRAME) f32, va: (B, N, 2) f32, va_history: (B, N, HIST) f32."""
    # TODO(synk): real Encoder (CPC/wav2vec CNN) is not defined in the
    # reference source; non-overlapping framing + affine projection stands in
    # for encode(). The z[:, :va.shape[1]] / vc[:, :z.shape[1]] crops are
    # identity here because the stand-in emits exactly N frames.
    wav_f = waveform.reshape(B, N, FRAME).reshape(T, FRAME)
    cond_f = jnp.concatenate(
        [va.reshape(T, 2), va_history.reshape(T, VA_HIST_BINS)],
        axis=-1).astype(jnp.float32)
    ones = jnp.ones((T, 1), jnp.float32)
    # packed LHS: [wav | va|va_hist | ones] -> one bf16 DMA
    x = jnp.concatenate([wav_f, cond_f, ones], axis=-1).astype(jnp.bfloat16)

    # ---- wrapper-side algebraic folds --------------------------------------
    # TODO(synk): real AR (GRU / transformer stack) is not defined in the
    # reference source; an affine D -> AR_DIM projection stands in. These
    # folds (W_ar @ W_vap, encoder folded through the head, LayerNorm
    # gamma/beta folded into the head) are only valid while the stand-ins
    # remain affine and must be undone when the real CNN/GRU modules land.
    w_head = params["w_ar"] @ params["w_vap"]                     # (D, 256)
    b_head = params["b_ar"] @ params["w_vap"] + params["b_vap"]   # (1, 256)
    w_wav = params["w_enc"] @ w_head                              # (FRAME, 256)
    w_vc = params["ln_g"].reshape(D, 1) * w_head                  # diag(g) @ W_head
    b_out = (params["b_enc"] @ w_head
             + params["ln_b"] @ w_head + b_head)                  # (1, 256)
    w_cond = jnp.concatenate([params["w_va"], params["w_vh"]], axis=0)  # (7, D)
    b_cond = params["b_va"] + params["b_vh"]                      # (1, D)

    # packed cond-weight slab: (48, 32) bf16, bias in the ones-lane row
    w_cond_slab = jnp.zeros((K_X, D), jnp.float32)
    w_cond_slab = w_cond_slab.at[FRAME:FRAME + COND_IN].set(w_cond)
    w_cond_slab = w_cond_slab.at[K_X - 1].set(b_cond[0])
    w_cond_slab = w_cond_slab.astype(jnp.bfloat16)

    # packed main-weight slab: (80, 256) bf16
    w_main_top = jnp.zeros((K_X, N_CLASSES), jnp.float32)
    w_main_top = w_main_top.at[0:FRAME].set(w_wav)
    w_main_top = w_main_top.at[K_X - 1].set(b_out[0])
    w_main_slab = jnp.concatenate([w_main_top, w_vc], axis=0).astype(jnp.bfloat16)

    out = pl.pallas_call(
        _projection_kernel,
        out_shape=jax.ShapeDtypeStruct((T, N_CLASSES), jnp.float32),
        grid=(1,),                            # whole problem fits one step
        in_specs=[
            _full_spec((T, K_X)),             # packed LHS (bf16)
            _full_spec((K_X, D)),             # packed VadCondition weight+bias
            _full_spec((K_W, N_CLASSES)),     # stacked head weights + bias
        ],
        out_specs=_full_spec((T, N_CLASSES)),
        compiler_params=pltpu.CompilerParams(
            dimension_semantics=("arbitrary",)),
    )(x, w_cond_slab, w_main_slab)

    return {"logits_vp": out.reshape(B, N, N_CLASSES)}


def reference_forward(waveform, va, va_history, params):
    """Unfused pure-JAX f32 reference (same stand-in encoder/AR)."""
    z = waveform.reshape(B, N, FRAME) @ params["w_enc"] + params["b_enc"]
    vc = (va @ params["w_va"] + params["b_va"]
          + va_history @ params["w_vh"] + params["b_vh"])
    mu = jnp.mean(vc, axis=-1, keepdims=True)
    var = jnp.mean((vc - mu) ** 2, axis=-1, keepdims=True)
    vc = (vc - mu) * jax.lax.rsqrt(var + LN_EPS) * params["ln_g"] + params["ln_b"]
    z = z + vc
    z = z @ params["w_ar"] + params["b_ar"]
    return z @ params["w_vap"] + params["b_vap"]


def init_params(key):
    ks = jax.random.split(key, 12)

    def lin(k, fan_in, fan_out):
        return (jax.random.normal(k, (fan_in, fan_out), jnp.float32)
                / jnp.sqrt(jnp.float32(fan_in)))

    def vec(k, n, scale=0.1):
        return scale * jax.random.normal(k, (1, n), jnp.float32)

    return {
        "w_enc": lin(ks[0], FRAME, D),
        "b_enc": vec(ks[1], D),
        "w_va":  lin(ks[2], 2, D),
        "b_va":  vec(ks[3], D),
        "w_vh":  lin(ks[4], VA_HIST_BINS, D),
        "b_vh":  vec(ks[5], D),
        "ln_g":  1.0 + 0.1 * jax.random.normal(ks[6], (1, D), jnp.float32),
        "ln_b":  vec(ks[7], D),
        "w_ar":  lin(ks[8], D, AR_DIM),
        "b_ar":  vec(ks[9], AR_DIM),
        "w_vap": lin(ks[10], AR_DIM, N_CLASSES),
        "b_vap": vec(ks[11], N_CLASSES),
    }


if __name__ == "__main__":
    key = jax.random.PRNGKey(0)
    k_w, k_v, k_h, k_p = jax.random.split(key, 4)

    waveform = jax.random.normal(k_w, (B, N * FRAME), jnp.float32)
    va = (jax.random.uniform(k_v, (B, N, 2)) > 0.5).astype(jnp.float32)
    va_history = jax.random.uniform(k_h, (B, N, VA_HIST_BINS), dtype=jnp.float32)
    params = init_params(k_p)

    out = projection_model_forward(waveform, va, va_history, params)
    logits = jax.block_until_ready(out["logits_vp"])
    assert logits.shape == (B, N, N_CLASSES)
    assert bool(jnp.all(jnp.isfinite(logits)))

    # Tolerance check vs. unfused f32 reference (bf16 MXU operands, f32 acc).
    ref = reference_forward(waveform, va, va_history, params)
    rel_err = jnp.linalg.norm(logits - ref) / jnp.linalg.norm(ref)
    assert float(rel_err) < 3e-2, f"relative error too large: {float(rel_err)}"

    print("KERNEL_OK")
</pallas_src>

<mosaic_0001>
module attributes {stable_mosaic.version = 11 : i64} {
  func.func @_projection_kernel(%arg0: i32, %arg1: memref<16x48xbf16, #tpu.memory_space<vmem>>, %arg2: memref<48x32xbf16, #tpu.memory_space<vmem>>, %arg3: memref<80x256xbf16, #tpu.memory_space<vmem>>, %arg4: memref<16x256xf32, #tpu.memory_space<vmem>>) attributes {dimension_semantics = [#tpu.dimension_semantics<arbitrary>], iteration_bounds = array<i64: 1>, scalar_prefetch = 0 : i64, scratch_operands = 0 : i64, tpu.core_type = #tpu.core_type<tc>, window_params = [{pipeline_mode = #tpu.pipeline_mode<synchronous>, transform_indices = @transform_0, window_bounds = array<i64: 16, 48>}, {pipeline_mode = #tpu.pipeline_mode<synchronous>, transform_indices = @transform_1, window_bounds = array<i64: 48, 32>}, {pipeline_mode = #tpu.pipeline_mode<synchronous>, transform_indices = @transform_2, window_bounds = array<i64: 80, 256>}, {pipeline_mode = #tpu.pipeline_mode<synchronous>, transform_indices = @transform_3, window_bounds = array<i64: 16, 256>}]} {
    %c0 = arith.constant 0 : index
    %c0_0 = arith.constant 0 : index
    %0 = vector.load %arg1[%c0, %c0_0] : memref<16x48xbf16, #tpu.memory_space<vmem>>, vector<16x48xbf16>
    %c0_1 = arith.constant 0 : index
    %c0_2 = arith.constant 0 : index
    %1 = vector.load %arg2[%c0_1, %c0_2] : memref<48x32xbf16, #tpu.memory_space<vmem>>, vector<48x32xbf16>
    %cst = arith.constant dense<0.000000e+00> : vector<16x32xf32>
    %2 = tpu.matmul %0, %1, %cst {dimension_numbers = #tpu.dot_dimension_numbers<[1], [0], [0], [1], [0, 0, 1, 1], [], []>} : vector<16x48xbf16>, vector<48x32xbf16>, vector<16x32xf32> -> vector<16x32xf32>
    %cst_3 = arith.constant dense<0.000000e+00> : vector<16xf32>
    %3 = vector.multi_reduction <add>, %2, %cst_3 [1] : vector<16x32xf32> to vector<16xf32>
    %4 = vector.shape_cast %3 : vector<16xf32> to vector<16x1xf32>
    %cst_4 = arith.constant 3.200000e+01 : f32
    %5 = vector.broadcast %cst_4 : f32 to vector<16x1xf32>
    %6 = arith.divf %4, %5 : vector<16x1xf32>
    %7 = vector.broadcast %6 : vector<16x1xf32> to vector<16x32xf32>
    %8 = arith.subf %2, %7 : vector<16x32xf32>
    %9 = arith.mulf %8, %8 : vector<16x32xf32>
    %cst_5 = arith.constant dense<0.000000e+00> : vector<16xf32>
    %10 = vector.multi_reduction <add>, %9, %cst_5 [1] : vector<16x32xf32> to vector<16xf32>
    %11 = vector.shape_cast %10 : vector<16xf32> to vector<16x1xf32>
    %cst_6 = arith.constant 3.200000e+01 : f32
    %12 = vector.broadcast %cst_6 : f32 to vector<16x1xf32>
    %13 = arith.divf %11, %12 : vector<16x1xf32>
    %cst_7 = arith.constant 9.99999974E-6 : f32
    %14 = vector.broadcast %cst_7 : f32 to vector<16x1xf32>
    %15 = arith.addf %13, %14 : vector<16x1xf32>
    %16 = math.rsqrt %15 : vector<16x1xf32>
    %17 = vector.broadcast %16 : vector<16x1xf32> to vector<16x32xf32>
    %18 = arith.mulf %8, %17 : vector<16x32xf32>
    %c0_8 = arith.constant 0 : index
    %c0_9 = arith.constant 0 : index
    %19 = vector.load %arg3[%c0_8, %c0_9] : memref<80x256xbf16, #tpu.memory_space<vmem>>, vector<48x256xbf16>
    %cst_10 = arith.constant dense<0.000000e+00> : vector<16x256xf32>
    %20 = tpu.matmul %0, %19, %cst_10 {dimension_numbers = #tpu.dot_dimension_numbers<[1], [0], [0], [1], [0, 0, 1, 1], [], []>} : vector<16x48xbf16>, vector<48x256xbf16>, vector<16x256xf32> -> vector<16x256xf32>
    %21 = arith.truncf %18 : vector<16x32xf32> to vector<16x32xbf16>
    %c48 = arith.constant 48 : index
    %c0_11 = arith.constant 0 : index
    %22 = vector.load %arg3[%c48, %c0_11] : memref<80x256xbf16, #tpu.memory_space<vmem>>, vector<32x256xbf16>
    %cst_12 = arith.constant dense<0.000000e+00> : vector<16x256xf32>
    %23 = tpu.matmul %21, %22, %cst_12 {dimension_numbers = #tpu.dot_dimension_numbers<[1], [0], [0], [1], [0, 0, 1, 1], [], []>} : vector<16x32xbf16>, vector<32x256xbf16>, vector<16x256xf32> -> vector<16x256xf32>
    %24 = arith.addf %20, %23 : vector<16x256xf32>
    %c0_13 = arith.constant 0 : index
    %c0_14 = arith.constant 0 : index
    %25 = vector.load %arg4[%c0_13, %c0_14] : memref<16x256xf32, #tpu.memory_space<vmem>>, vector<16x256xf32>
    tpu.vector_store %arg4[%c0_13, %c0_14], %24 {strides = array<i32>} : memref<16x256xf32, #tpu.memory_space<vmem>>, vector<16x256xf32>,
    return
  }
  func.func @transform_0(%arg0: i32) -> (i32, i32) {
    %c0_i32 = arith.constant 0 : i32
    %c0_i32_0 = arith.constant 0 : i32
    %c0_i32_1 = arith.constant 0 : i32
    return %c0_i32, %c0_i32_0 : i32, i32
  }
  func.func @transform_1(%arg0: i32) -> (i32, i32) {
    %c0_i32 = arith.constant 0 : i32
    %c0_i32_0 = arith.constant 0 : i32
    %c0_i32_1 = arith.constant 0 : i32
    return %c0_i32, %c0_i32_0 : i32, i32
  }
  func.func @transform_2(%arg0: i32) -> (i32, i32) {
    %c0_i32 = arith.constant 0 : i32
    %c0_i32_0 = arith.constant 0 : i32
    %c0_i32_1 = arith.constant 0 : i32
    return %c0_i32, %c0_i32_0 : i32, i32
  }
  func.func @transform_3(%arg0: i32) -> (i32, i32) {
    %c0_i32 = arith.constant 0 : i32
    %c0_i32_0 = arith.constant 0 : i32
    %c0_i32_1 = arith.constant 0 : i32
    return %c0_i32, %c0_i32_0 : i32, i32
  }
}

</mosaic_0001>

<bundles_post_ra>
// kernel: tpu_custom_call.1
= control target key start
LH: loop header
LB: loop body
LE: loop exit
PB: predicated region body
PF: predicated region fallthrough
CT: control target
= control target key end

     0   :  { %8 = vsyncpa [#allocation3], 0  ;;  %s492_s0 = inlined_call_operand.vmem [shape: bf16[16,48], index: 0, kind: input, shape index: {}]   ;;  %s493_s1 = inlined_call_operand.vmem [shape: bf16[48,32], index: 1, kind: input, shape index: {}]   ;;  %s494_s2 = inlined_call_operand.hbm [shape: bf16[80,256], index: 2, kind: input, shape index: {}]   ;;  %s495_s3 = inlined_call_operand.hbm [shape: f32[16,256], index: 3, kind: output, shape index: {}]  }
   0x1   :  { %9 = vsyncpa [#allocation4], 0  ;;  %s420_s12 = smov [#allocation2]   ;;  %s372_s16 = scalar_lea.hbm %s494_s2, 1280 }
   0x2   :  { %s19_s13 = sshll.u32 %s420_s12, 4  ;;  %p373_p0 = scmp.ne.s32.totalorder %s494_s2, %s372_s16  ;;  %s20_s13 = int_to_ptr.vmem [resolvable:$true] %s19_s13 }
   0x3   :  { %p376_p1 = scmp.lt.u32.totalorder %s372_s16, %s494_s2 }
   0x5   :  { %p378_p2 = pnand %p376_p1, %p373_p0 }
   0x7   :  { %381 = shalt.err (!%p378_p2)
}
   0x8   :  { %s382_s21 = scalar_lea.vmem %s20_s13, 1280  ;;  %p387_p4 = scmp.lt.s32.totalorder %s20_s13, %s20_s13 }
   0x9   :  { %p383_p3 = scmp.ne.s32.totalorder %s20_s13, %s382_s21  ;;  %p388_p5 = scmp.lt.s32.totalorder %s382_s21, %s382_s21 }
   0xb   :  { %p389_p6 = por %p388_p5, %p387_p4 }
   0xd   :  { %p390_p7 = pnand %p389_p6, %p383_p3 }
   0xf   :  { %393 = shalt.err (!%p390_p7)
}
  0x10   :  { %s421_s22 = smov 128   ;;  %s422_s23 = smov 8  }
  0x11   :  { %25 = dma.hbm_to_vmem [thread:$0]  %s494_s2, 1280, %s20_s13, [#allocation3], %s421_s22, %s421_s22, %s422_s23  }
  0x12   :  { %416 = dma.done.wait [#allocation3], 1280  }
  0x13   :  { %417 = vsyncadd [#allocation3], 4294966016  ;;  %v423_v0 = vmov 0.0   ;;  %vm424_vm0 = vmmov 0   ;;  %v349_v1 = vld [vmem:[%s493_s1] sm:$0xff]   ;;  %v350_v2 = vld [vmem:[%s493_s1 + $0x8] sm:$0xff]  }
  0x14   :  { %326 = vmatprep.subr.bf16.mxu0 %v423_v0  ;;  %332 = vmatprep.mubr.msk.bf16.mxu0 %vm424_vm0, %v423_v0  ;;  %v351_v3 = vld [vmem:[%s493_s1 + $0x10] sm:$0xff]   ;;  %v352_v4 = vld [vmem:[%s492_s0] sm:$0xff]   ;;  %vm61_vm1 = vcmask 392192   ;;  %vm106_vm2 = vcmask 261120   ;;  %v425_v24 = vmov 0   ;;  %s426_s0 = smov [#allocation5]  }
  0x15   :  { %327 = vmatpush3.bf16.msra.mxu0 %v349_v1  ;;  %v353_v21 = vld [vmem:[#allocation2 + $0x34] ss:$8 sps:$4 sm:$0xff]   ;;  %v355_v22 = vld [vmem:[#allocation2 + $0x30] ss:$8 sps:$4 sm:$0xff]   ;;  %v356_v23 = vld [vmem:[#allocation2 + $0x44] ss:$8 sps:$4 sm:$0xff]   ;;  %200 = vmatprep.mubr.bf16.mxu1 %v425_v24 }
  0x16   :  { %328 = vmatprep.subr.bf16.mxu0 %v423_v0  ;;  %168 = vmatprep.subr.bf16.mxu1 %v353_v21  ;;  %v358_v25 = vld [vmem:[#allocation2 + $0x40] ss:$8 sps:$4 sm:$0xff]   ;;  %v361_v26 = vld [vmem:[#allocation2 + $0x4] ss:$8 sps:$4 sm:$0xff]   ;;  %v364_v39 = vld [vmem:[#allocation2 + $0x14] ss:$8 sps:$4 sm:$0xff]  }
  0x17   :  { %169 = vmatpush1.bf16.msra.mxu1 %v355_v22  ;;  %v359_v37 = vld [vmem:[#allocation2] ss:$8 sps:$4 sm:$0xff]   ;;  %v362_v40 = vld [vmem:[#allocation2 + $0x10] ss:$8 sps:$4 sm:$0xff]   ;;  %v367_v41 = vld [vmem:[#allocation2 + $0x24] ss:$8 sps:$4 sm:$0xff]  }
  0x18   :  { %170 = vmatprep.subr.bf16.mxu1 %v356_v23  ;;  %v365_v42 = vld [vmem:[#allocation2 + $0x20] ss:$8 sps:$4 sm:$0xff]   ;;  %s293_s1 = sshll.u32 %s426_s0, 4  ;;  %s294_s1 = int_to_ptr.vmem [resolvable:$true] %s293_s1 }
  0x19   :  { %329 = vmatpush3.bf16.msra.mxu0 %v350_v2  ;;  %s394_s6 = scalar_lea.vmem %s294_s1, 512  ;;  %p399_p9 = scmp.lt.s32.totalorder %s294_s1, %s294_s1 }
  0x1a   :  { %330 = vmatprep.subr.bf16.mxu0 %v423_v0  ;;  %p395_p8 = scmp.ne.s32.totalorder %s294_s1, %s394_s6  ;;  %p400_p10 = scmp.lt.s32.totalorder %s394_s6, %s394_s6 }
  0x1b   :  { %171 = vmatpush1.bf16.msra.mxu1 %v358_v25 }
  0x1c   :  { %241 = vmatprep.subr.bf16.mxu1 %v361_v26  ;;  %p401_p11 = por %p400_p10, %p399_p9 }
  0x1d   :  { %331 = vmatpush3.bf16.msra.mxu0 %v351_v3 }
  0x1e   :  { %p402_p12 = pnand %p401_p11, %p395_p8 }
  0x20   :  { %333 = vmatmul.mubr.msk.bf16.vlgmr.msra.gmra.mrb[0].mxu0 %vm61_vm1, %v352_v4 }
  0xf3   :  { %v99_v5 = vpop.f32.mrb[0].mxu0 }
  0xf4   :  { %v334_v6 = vpop.f32.mrb[1].mxu0  ;;  %v107_v7 = vsel %vm106_vm2, %v99_v5, 0.0 }
  0xf5   :  { %108 = vadd.xlane.f32.xlu0 %v107_v7  ;;  %v102_v8 = vpop.f32.mrb[2].mxu0 }
  0xf6   :  { %v335_v9 = vpop.f32.mrb[3].mxu0  ;;  %v110_v10 = vsel %vm106_vm2, %v102_v8, 0.0 }
  0xf9   :  { %111 = vadd.xlane.f32.xlu0 %v110_v10 }
 0x182   :  { %v109_v11 = vpop.xlane.xlu0 %108 }
 0x183   :  { %v114_v12 = vmul.f32 0.03125, %v109_v11 }
 0x185   :  { %v116_v13 = vsub.f32 %v99_v5, %v114_v12 }
 0x186   :  { %v112_v14 = vpop.xlane.xlu0 %111 }
 0x187   :  { %v115_v15 = vmul.f32 0.03125, %v112_v14  ;;  %v118_v16 = vmul.f32 %v116_v13, %v116_v13 }
 0x189   :  { %v117_v17 = vsub.f32 %v102_v8, %v115_v15  ;;  %v120_v18 = vsel %vm106_vm2, %v118_v16, 0.0 }
 0x18a   :  { %121 = vadd.xlane.f32.xlu1 %v120_v18 }
 0x18b   :  { %v119_v19 = vmul.f32 %v117_v17, %v117_v17 }
 0x18d   :  { %v123_v20 = vsel %vm106_vm2, %v119_v19, 0.0 }
 0x18e   :  { %124 = vadd.xlane.f32.xlu1 %v123_v20 }
 0x217   :  { %v122_v27 = vpop.xlane.xlu1 %121 }
 0x218   :  { %v126_v28 = vmul.f32 0.03125, %v122_v27 }
 0x21a   :  { %v128_v29 = vadd.f32 1e-05, %v126_v28 }
 0x21b   :  { %v125_v30 = vpop.xlane.xlu1 %124 }
 0x21c   :  { %v127_v31 = vmul.f32 0.03125, %v125_v30  ;;  %368 = vrsqrt.f32 %v128_v29 }
 0x21e   :  { %v129_v32 = vadd.f32 1e-05, %v127_v31 }
 0x220   :  { %370 = vrsqrt.f32 %v129_v32 }
 0x226   :  { %v369_v33 = vpop.eup %368 }
 0x227   :  { %v132_v35 = vmul.f32 %v369_v33, %v116_v13 }
 0x22a   :  { %v371_v34 = vpop.eup %370 }
 0x22b   :  { %v133_v36 = vmul.f32 %v371_v34, %v117_v17 }
 0x22d   :  { %v140_v38 = vpack.c.bf16 %v133_v36, %v132_v35 }
 0x22f   :  { %314 = vmatmul.mubr.msk.bf16.vlgmr.msra.gmra.mrb[0].mxu1 %vm106_vm2, %v140_v38 }
 0x230   :  { %242 = vmatpush1.bf16.msra.mxu1 %v359_v37  ;;  %273 = vmatprep.mubr.bf16.mxu1 %v425_v24 }
 0x231   :  { %243 = vmatprep.subr.bf16.mxu1 %v364_v39 }
 0x234   :  { %244 = vmatpush1.bf16.msra.mxu1 %v362_v40 }
 0x235   :  { %245 = vmatprep.subr.bf16.mxu1 %v367_v41 }
 0x238   :  { %246 = vmatpush1.bf16.msra.mxu1 %v365_v42 }
 0x23b   :  { %321 = vmatmul.mubr.msk.bf16.vlgmr.msra.gmra.mrb[0].mxu1 %vm61_vm1, %v352_v4 }
 0x30e   :  { %v275_v43 = vpop.f32.mrb[0].mxu1 }
 0x30f   :  { %284 = vst [vmem:[#allocation5] sm:$0xff] %v275_v43  ;;  %v277_v44 = vpop.f32.mrb[1].mxu1 }
 0x310   :  { %285 = vst [vmem:[#allocation5 + $0x8] sm:$0xff] %v277_v44  ;;  %v279_v45 = vpop.f32.mrb[2].mxu1 }
 0x311   :  { %286 = vst [vmem:[#allocation5 + $0x10] sm:$0xff] %v279_v45  ;;  %v281_v46 = vpop.f32.mrb[3].mxu1 }
 0x312   :  { %287 = vst [vmem:[#allocation5 + $0x18] sm:$0xff] %v281_v46 }
 0x313   :  { %405 = shalt.err (!%p402_p12)
}
 0x314   :  { %s406_s9 = scalar_lea.hbm %s495_s3, 512 }
 0x315   :  { %p407_p13 = scmp.ne.s32.totalorder %s495_s3, %s406_s9  ;;  %p410_p0 = scmp.lt.u32.totalorder %s406_s9, %s495_s3 }
 0x317   :  { %p412_p1 = pnand %p410_p0, %p407_p13 }
 0x319   :  { %415 = shalt.err (!%p412_p1)
}
 0x31a   :  { %s427_s14 = smov 256   ;;  %s428_s15 = smov 16  }
 0x31b   :  { %299 = dma.vmem_to_hbm [thread:$0]  %s294_s1, 512, %s495_s3, [#allocation4], %s427_s14, %s427_s14, %s428_s15  }
 0x31c   :  { %418 = dma.done.wait [#allocation4], 512  }
 0x31d   :  { %419 = vsyncadd [#allocation4], 4294966784 }
 0x31e   :  { %303 = vsyncpa [#allocation3], 1 }
 0x31f   :  { %304 = vsyncpa [#allocation4], 1 }

</bundles_post_ra>
